<compile_context>
chip_gen: v6e
topology: v6e:2x2x1
jax: 0.10.0
libtpu: 0.0.40
codegen_flags: <defaults>
</compile_context>

<pallas_src>
import jax
import jax.numpy as jnp
from jax.experimental import pallas as pl
from jax.experimental.pallas import tpu as pltpu

_OUT_S, _OUT_L = 8, 128   # lane-dense per-batch-tile output block (sublane, lane)
_EPS = 1e-9


def _pick_batch_tile(B, H, W, budget_bytes=12 * 1024 * 1024):
    """Largest divisor of B whose per-grid-step VMEM footprint fits the budget.

    Per batch item (f32 planes of H*W):
      double-buffered inputs (I, b, e, one u class plane)        ~  8 planes
      persistent scratch (bd, db, invN)                          ~  3 planes
      live in-kernel intermediates (3-wide box stack, rolls, ...)~ 21 planes
    Budget is sized against v7x's 32 MiB scoped-VMEM default (the most constrained
    generation); the explicit vmem_limit_bytes below covers v5e's smaller default.
    """
    per_item = 32 * H * W * 4
    bt = max(1, min(B, budget_bytes // max(per_item, 1)))
    if B >= 2:
        # keep >= 2 grid points on the "parallel" batch axis so both v7x TensorCores
        # get work (negligible extra per-step overhead on single-TC v5e/v6e).
        bt = min(bt, max(1, B // 2))
    while B % bt:                       # largest divisor of B not exceeding bt
        bt -= 1
    return bt


def _make_kernel(Bt, C, H, W, size, p, lamda):
    pad = size // 2
    offs = list(range(-pad, size - pad))    # taps of a `size` filter with padding=size//2
    thres = float(lamda) / 2.0

    def _upow(x):
        # u ** p; repeated multiply for integer p >= 1 (avoids EUP exp/log pair).
        if float(p).is_integer() and p >= 1:
            out = x
            for _ in range(int(p) - 1):
                out = out * x
            return out
        # TODO(synk): fractional p costs 2 EUP transcendentals / element / class.
        return jnp.power(x, p)

    def kernel(I_ref, b_ref, e_ref, u_ref, loss_ref, bd_ref, db_ref, invN_ref):
        f32 = jnp.float32
        c = pl.program_id(1)

        I = I_ref[:, 0]            # (Bt, H, W)
        b = b_ref[:, 0]
        e = e_ref[:, 0]
        u = u_ref[:, 0]

        # Boundary masks for the rolled box-filter taps: pltpu.roll wraps, so the
        # wrapped rows/cols (outside the image) are zeroed with these masks.
        rows = jax.lax.broadcasted_iota(jnp.int32, (H, W), 0)
        cols = jax.lax.broadcasted_iota(jnp.int32, (H, W), 1)
        row_mask, col_mask = {}, {}
        for o in offs:
            if o > 0:
                row_mask[o] = (rows < H - o).astype(f32)
                col_mask[o] = (cols < W - o).astype(f32)
            elif o < 0:
                row_mask[o] = (rows >= -o).astype(f32)
                col_mask[o] = (cols >= -o).astype(f32)

        def box(x):
            """Separable size x size box sum with zero (outside-image) boundary."""
            ah, aw = x.ndim - 2, x.ndim - 1
            v = None
            for o in offs:                                   # vertical (sublane) pass
                if o == 0:
                    t = x
                else:                                        # result[r] = x[r + o]
                    t = pltpu.roll(x, (H - o) if o > 0 else -o, axis=ah) * row_mask[o]
                v = t if v is None else v + t
            s = None
            for o in offs:                                   # horizontal (lane) pass
                if o == 0:
                    t = v
                else:                                        # result[w] = v[w + o]
                    t = pltpu.roll(v, (W - o) if o > 0 else -o, axis=aw) * col_mask[o]
                s = t if s is None else s + t
            return s

        # maskCreate(I): foreground mask (inferred: I > 0).
        m = (I > 0).astype(f32)

        @pl.when(c == 0)
        def _():
            bd_ref[...] = jnp.zeros_like(bd_ref)
            db_ref[...] = jnp.zeros_like(db_ref)
            # partialFilter normaliser: 1 / (# valid pixels in each window)
            invN_ref[...] = 1.0 / (box(m) + _EPS)

        invN = invN_ref[...]
        up_m = _upow(u) * m
        Ie = (I - e) * b
        b2 = b * b

        # One fused box-filter pass for the three per-class planes.
        stacked = jnp.concatenate([up_m, Ie * up_m, b2 * up_m], axis=0)   # (3*Bt, H, W)
        bs = box(stacked)
        db_sub = bs[0:Bt] * invN                    # convParFilt(u^p, kernel)
        num = bs[Bt:2 * Bt] * invN
        den = bs[2 * Bt:3 * Bt] * invN
        v_i = num / (den + _EPS)                    # classCenter (local class centre)

        bd_ref[...] = bd_ref[...] + (I - b * v_i) * db_sub
        db_ref[...] = db_ref[...] + db_sub

        @pl.when(c == C - 1)
        def _():
            bd = bd_ref[...]
            bd_s = bd - jnp.clip(bd, -thres, thres)        # softThres(bd, lamda/2)
            e_new = bd_s / (db_ref[...] + _EPS)            # matches reference eps exactly
            diff = e - e_new
            part = jnp.sum(diff * diff, axis=0)            # (H, W)
            part = jnp.sum(part, keepdims=True)            # (1, 1) partial SSE for this tile
            # lane-dense splat; the wrapper reads [:, 0, 0]
            loss_ref[...] = jnp.zeros((1, _OUT_S, _OUT_L), f32) + part[None]

    return kernel


def noise_predict_loss(I, u, b, e, p=2.0, size=3, lamda=21.0):
    """Forward pass of NoisePredictLoss.  I, b, e: (B,1,H,W); u: (B,C,H,W)."""
    f32 = jnp.float32
    I, u, b, e = (x.astype(f32) for x in (I, u, b, e))
    B, C, H, W = u.shape

    Bt = _pick_batch_tile(B, H, W)
    G = B // Bt

    kernel = _make_kernel(Bt, C, H, W, int(size), float(p), float(lamda))

    # I/b/e blocks return the same block index across the class axis -> VMEM-resident;
    # u streams one class plane per grid step.  (I/b/e deliberately kept as separate
    # inputs: a wrapper-side concat would add an extra HBM copy for no per-step gain.)
    img_spec = pl.BlockSpec((Bt, 1, H, W), lambda g, c: (g, 0, 0, 0))
    u_spec = pl.BlockSpec((Bt, 1, H, W), lambda g, c: (g, c, 0, 0))
    out_spec = pl.BlockSpec((1, _OUT_S, _OUT_L), lambda g, c: (g, 0, 0))

    partial = pl.pallas_call(
        kernel,
        out_shape=jax.ShapeDtypeStruct((G, _OUT_S, _OUT_L), f32),
        grid_spec=pltpu.PrefetchScalarGridSpec(
            num_scalar_prefetch=0,
            grid=(G, C),
            in_specs=[img_spec, img_spec, img_spec, u_spec],
            out_specs=out_spec,
            scratch_shapes=[
                pltpu.VMEM((Bt, H, W), f32),   # bd accumulator
                pltpu.VMEM((Bt, H, W), f32),   # db accumulator
                pltpu.VMEM((Bt, H, W), f32),   # invN (partial-filter normaliser)
            ],
        ),
        compiler_params=pltpu.CompilerParams(
            dimension_semantics=("parallel", "arbitrary"),
            vmem_limit_bytes=32 * 1024 * 1024,
        ),
    )(I, b, e, u)

    # mean over the (B, 1, H, W) residual
    return jnp.sum(partial[:, 0, 0]) / float(B * H * W)


if __name__ == "__main__":
    key = jax.random.PRNGKey(0)
    B, C, H, W = 2, 4, 16, 128
    k1, k2, k3, k4 = jax.random.split(key, 4)
    I = jax.random.uniform(k1, (B, 1, H, W), jnp.float32)              # image
    u = jax.nn.softmax(jax.random.normal(k2, (B, C, H, W)), axis=1)    # memberships
    b = 1.0 + 0.1 * jax.random.normal(k3, (B, 1, H, W))                # bias field
    e = 0.1 * jax.random.normal(k4, (B, 1, H, W))                      # noise estimate

    loss = noise_predict_loss(I, u, b, e, p=2.0, size=3, lamda=21.0)
    jax.block_until_ready(loss)
    assert bool(jnp.isfinite(loss))
    print("KERNEL_OK")
</pallas_src>

<mosaic_0001>
module attributes {stable_mosaic.version = 11 : i64} {
  func.func @kernel(%arg0: i32, %arg1: i32, %arg2: memref<1x1x16x128xf32, #tpu.memory_space<vmem>>, %arg3: memref<1x1x16x128xf32, #tpu.memory_space<vmem>>, %arg4: memref<1x1x16x128xf32, #tpu.memory_space<vmem>>, %arg5: memref<1x1x16x128xf32, #tpu.memory_space<vmem>>, %arg6: memref<1x8x128xf32, #tpu.memory_space<vmem>>, %arg7: memref<1x16x128xf32, #tpu.memory_space<vmem>>, %arg8: memref<1x16x128xf32, #tpu.memory_space<vmem>>, %arg9: memref<1x16x128xf32, #tpu.memory_space<vmem>>) attributes {dimension_semantics = [#tpu.dimension_semantics<parallel>, #tpu.dimension_semantics<arbitrary>], iteration_bounds = array<i64: 2, 4>, scalar_prefetch = 0 : i64, scratch_operands = 3 : i64, tpu.core_type = #tpu.core_type<tc>, window_params = [{transform_indices = @transform_0, window_bounds = array<i64: 1, 1, 16, 128>}, {transform_indices = @transform_1, window_bounds = array<i64: 1, 1, 16, 128>}, {transform_indices = @transform_2, window_bounds = array<i64: 1, 1, 16, 128>}, {transform_indices = @transform_3, window_bounds = array<i64: 1, 1, 16, 128>}, {transform_indices = @transform_4, window_bounds = array<i64: 1, 8, 128>}]} {
    %c0 = arith.constant 0 : index
    %c0_0 = arith.constant 0 : index
    %c0_1 = arith.constant 0 : index
    %c0_2 = arith.constant 0 : index
    %0 = vector.load %arg2[%c0, %c0_0, %c0_1, %c0_2] : memref<1x1x16x128xf32, #tpu.memory_space<vmem>>, vector<1x1x16x128xf32>
    %1 = vector.shape_cast %0 : vector<1x1x16x128xf32> to vector<1x16x128xf32>
    %c0_3 = arith.constant 0 : index
    %c0_4 = arith.constant 0 : index
    %c0_5 = arith.constant 0 : index
    %c0_6 = arith.constant 0 : index
    %2 = vector.load %arg3[%c0_3, %c0_4, %c0_5, %c0_6] : memref<1x1x16x128xf32, #tpu.memory_space<vmem>>, vector<1x1x16x128xf32>
    %3 = vector.shape_cast %2 : vector<1x1x16x128xf32> to vector<1x16x128xf32>
    %c0_7 = arith.constant 0 : index
    %c0_8 = arith.constant 0 : index
    %c0_9 = arith.constant 0 : index
    %c0_10 = arith.constant 0 : index
    %4 = vector.load %arg4[%c0_7, %c0_8, %c0_9, %c0_10] : memref<1x1x16x128xf32, #tpu.memory_space<vmem>>, vector<1x1x16x128xf32>
    %5 = vector.shape_cast %4 : vector<1x1x16x128xf32> to vector<1x16x128xf32>
    %c0_11 = arith.constant 0 : index
    %c0_12 = arith.constant 0 : index
    %c0_13 = arith.constant 0 : index
    %c0_14 = arith.constant 0 : index
    %6 = vector.load %arg5[%c0_11, %c0_12, %c0_13, %c0_14] : memref<1x1x16x128xf32, #tpu.memory_space<vmem>>, vector<1x1x16x128xf32>
    %7 = vector.shape_cast %6 : vector<1x1x16x128xf32> to vector<1x16x128xf32>
    %8 = tpu.iota {dimensions = array<i32: 0>} : vector<16x128xi32>
    %9 = tpu.iota {dimensions = array<i32: 1>} : vector<16x128xi32>
    %c1_i32 = arith.constant 1 : i32
    %10 = vector.broadcast %c1_i32 : i32 to vector<16x128xi32>
    %11 = arith.cmpi sge, %8, %10 : vector<16x128xi32>
    %12 = arith.extui %11 : vector<16x128xi1> to vector<16x128xi32>
    %13 = arith.sitofp %12 : vector<16x128xi32> to vector<16x128xf32>
    %c1_i32_15 = arith.constant 1 : i32
    %14 = vector.broadcast %c1_i32_15 : i32 to vector<16x128xi32>
    %15 = arith.cmpi sge, %9, %14 : vector<16x128xi32>
    %16 = arith.extui %15 : vector<16x128xi1> to vector<16x128xi32>
    %17 = arith.sitofp %16 : vector<16x128xi32> to vector<16x128xf32>
    %c15_i32 = arith.constant 15 : i32
    %18 = vector.broadcast %c15_i32 : i32 to vector<16x128xi32>
    %19 = arith.cmpi slt, %8, %18 : vector<16x128xi32>
    %20 = arith.extui %19 : vector<16x128xi1> to vector<16x128xi32>
    %21 = arith.sitofp %20 : vector<16x128xi32> to vector<16x128xf32>
    %c127_i32 = arith.constant 127 : i32
    %22 = vector.broadcast %c127_i32 : i32 to vector<16x128xi32>
    %23 = arith.cmpi slt, %9, %22 : vector<16x128xi32>
    %24 = arith.extui %23 : vector<16x128xi1> to vector<16x128xi32>
    %25 = arith.sitofp %24 : vector<16x128xi32> to vector<16x128xf32>
    %cst = arith.constant 0.000000e+00 : f32
    %26 = vector.broadcast %cst : f32 to vector<1x16x128xf32>
    %27 = arith.cmpf ogt, %1, %26 : vector<1x16x128xf32>
    %28 = arith.extui %27 : vector<1x16x128xi1> to vector<1x16x128xi32>
    %29 = arith.sitofp %28 : vector<1x16x128xi32> to vector<1x16x128xf32>
    %c0_i32 = arith.constant 0 : i32
    %30 = arith.cmpi eq, %arg1, %c0_i32 : i32
    %31 = arith.extui %30 : i1 to i32
    %c0_i32_16 = arith.constant 0 : i32
    %32 = arith.cmpi ne, %31, %c0_i32_16 : i32
    scf.if %32 {
      %cst_38 = arith.constant 0.000000e+00 : f32
      %83 = vector.broadcast %cst_38 : f32 to vector<1x16x128xf32>
      %c0_39 = arith.constant 0 : index
      %c0_40 = arith.constant 0 : index
      %c0_41 = arith.constant 0 : index
      %84 = vector.load %arg7[%c0_39, %c0_40, %c0_41] : memref<1x16x128xf32, #tpu.memory_space<vmem>>, vector<1x16x128xf32>
      tpu.vector_store %arg7[%c0_39, %c0_40, %c0_41], %83 {strides = array<i32>} : memref<1x16x128xf32, #tpu.memory_space<vmem>>, vector<1x16x128xf32>,
      %cst_42 = arith.constant 0.000000e+00 : f32
      %85 = vector.broadcast %cst_42 : f32 to vector<1x16x128xf32>
      %c0_43 = arith.constant 0 : index
      %c0_44 = arith.constant 0 : index
      %c0_45 = arith.constant 0 : index
      %86 = vector.load %arg8[%c0_43, %c0_44, %c0_45] : memref<1x16x128xf32, #tpu.memory_space<vmem>>, vector<1x16x128xf32>
      tpu.vector_store %arg8[%c0_43, %c0_44, %c0_45], %85 {strides = array<i32>} : memref<1x16x128xf32, #tpu.memory_space<vmem>>, vector<1x16x128xf32>,
      %c1_i32_46 = arith.constant 1 : i32
      %87 = tpu.dynamic_rotate %29 by %c1_i32_46 dim 1 : vector<1x16x128xf32>, i32 -> vector<1x16x128xf32>
      %88 = vector.shape_cast %13 : vector<16x128xf32> to vector<1x16x128xf32>
      %89 = arith.mulf %87, %88 : vector<1x16x128xf32>
      %90 = arith.addf %89, %29 : vector<1x16x128xf32>
      %c15_i32_47 = arith.constant 15 : i32
      %91 = tpu.dynamic_rotate %29 by %c15_i32_47 dim 1 : vector<1x16x128xf32>, i32 -> vector<1x16x128xf32>
      %92 = vector.shape_cast %21 : vector<16x128xf32> to vector<1x16x128xf32>
      %93 = arith.mulf %91, %92 : vector<1x16x128xf32>
      %94 = arith.addf %90, %93 : vector<1x16x128xf32>
      %c1_i32_48 = arith.constant 1 : i32
      %95 = tpu.dynamic_rotate %94 by %c1_i32_48 dim 2 : vector<1x16x128xf32>, i32 -> vector<1x16x128xf32>
      %96 = vector.shape_cast %17 : vector<16x128xf32> to vector<1x16x128xf32>
      %97 = arith.mulf %95, %96 : vector<1x16x128xf32>
      %98 = arith.addf %97, %94 : vector<1x16x128xf32>
      %c127_i32_49 = arith.constant 127 : i32
      %99 = tpu.dynamic_rotate %94 by %c127_i32_49 dim 2 : vector<1x16x128xf32>, i32 -> vector<1x16x128xf32>
      %100 = vector.shape_cast %25 : vector<16x128xf32> to vector<1x16x128xf32>
      %101 = arith.mulf %99, %100 : vector<1x16x128xf32>
      %102 = arith.addf %98, %101 : vector<1x16x128xf32>
      %cst_50 = arith.constant 9.99999971E-10 : f32
      %103 = vector.broadcast %cst_50 : f32 to vector<1x16x128xf32>
      %104 = arith.addf %102, %103 : vector<1x16x128xf32>
      %cst_51 = arith.constant 1.000000e+00 : f32
      %105 = vector.broadcast %cst_51 : f32 to vector<1x16x128xf32>
      %106 = arith.divf %105, %104 : vector<1x16x128xf32>
      %c0_52 = arith.constant 0 : index
      %c0_53 = arith.constant 0 : index
      %c0_54 = arith.constant 0 : index
      %107 = vector.load %arg9[%c0_52, %c0_53, %c0_54] : memref<1x16x128xf32, #tpu.memory_space<vmem>>, vector<1x16x128xf32>
      tpu.vector_store %arg9[%c0_52, %c0_53, %c0_54], %106 {strides = array<i32>} : memref<1x16x128xf32, #tpu.memory_space<vmem>>, vector<1x16x128xf32>,
    } else {
    }
    %c0_17 = arith.constant 0 : index
    %c0_18 = arith.constant 0 : index
    %c0_19 = arith.constant 0 : index
    %33 = vector.load %arg9[%c0_17, %c0_18, %c0_19] : memref<1x16x128xf32, #tpu.memory_space<vmem>>, vector<1x16x128xf32>
    %34 = arith.mulf %7, %7 : vector<1x16x128xf32>
    %35 = arith.mulf %34, %29 : vector<1x16x128xf32>
    %36 = arith.subf %1, %5 : vector<1x16x128xf32>
    %37 = arith.mulf %36, %3 : vector<1x16x128xf32>
    %38 = arith.mulf %3, %3 : vector<1x16x128xf32>
    %39 = arith.mulf %37, %35 : vector<1x16x128xf32>
    %40 = arith.mulf %38, %35 : vector<1x16x128xf32>
    %41 = tpu.concatenate %35, %39, %40 in 0 : vector<1x16x128xf32>, vector<1x16x128xf32>, vector<1x16x128xf32> -> vector<3x16x128xf32>
    %c1_i32_20 = arith.constant 1 : i32
    %42 = tpu.dynamic_rotate %41 by %c1_i32_20 dim 1 : vector<3x16x128xf32>, i32 -> vector<3x16x128xf32>
    %43 = vector.shape_cast %13 : vector<16x128xf32> to vector<1x16x128xf32>
    %44 = vector.broadcast %43 : vector<1x16x128xf32> to vector<3x16x128xf32>
    %45 = arith.mulf %42, %44 : vector<3x16x128xf32>
    %46 = arith.addf %45, %41 : vector<3x16x128xf32>
    %c15_i32_21 = arith.constant 15 : i32
    %47 = tpu.dynamic_rotate %41 by %c15_i32_21 dim 1 : vector<3x16x128xf32>, i32 -> vector<3x16x128xf32>
    %48 = vector.shape_cast %21 : vector<16x128xf32> to vector<1x16x128xf32>
    %49 = vector.broadcast %48 : vector<1x16x128xf32> to vector<3x16x128xf32>
    %50 = arith.mulf %47, %49 : vector<3x16x128xf32>
    %51 = arith.addf %46, %50 : vector<3x16x128xf32>
    %c1_i32_22 = arith.constant 1 : i32
    %52 = tpu.dynamic_rotate %51 by %c1_i32_22 dim 2 : vector<3x16x128xf32>, i32 -> vector<3x16x128xf32>
    %53 = vector.shape_cast %17 : vector<16x128xf32> to vector<1x16x128xf32>
    %54 = vector.broadcast %53 : vector<1x16x128xf32> to vector<3x16x128xf32>
    %55 = arith.mulf %52, %54 : vector<3x16x128xf32>
    %56 = arith.addf %55, %51 : vector<3x16x128xf32>
    %c127_i32_23 = arith.constant 127 : i32
    %57 = tpu.dynamic_rotate %51 by %c127_i32_23 dim 2 : vector<3x16x128xf32>, i32 -> vector<3x16x128xf32>
    %58 = vector.shape_cast %25 : vector<16x128xf32> to vector<1x16x128xf32>
    %59 = vector.broadcast %58 : vector<1x16x128xf32> to vector<3x16x128xf32>
    %60 = arith.mulf %57, %59 : vector<3x16x128xf32>
    %61 = arith.addf %56, %60 : vector<3x16x128xf32>
    %62 = vector.extract_strided_slice %61 {offsets = [0, 0, 0], sizes = [1, 16, 128], strides = [1, 1, 1]} : vector<3x16x128xf32> to vector<1x16x128xf32>
    %63 = arith.mulf %62, %33 : vector<1x16x128xf32>
    %64 = vector.extract_strided_slice %61 {offsets = [1, 0, 0], sizes = [1, 16, 128], strides = [1, 1, 1]} : vector<3x16x128xf32> to vector<1x16x128xf32>
    %65 = arith.mulf %64, %33 : vector<1x16x128xf32>
    %66 = vector.extract_strided_slice %61 {offsets = [2, 0, 0], sizes = [1, 16, 128], strides = [1, 1, 1]} : vector<3x16x128xf32> to vector<1x16x128xf32>
    %67 = arith.mulf %66, %33 : vector<1x16x128xf32>
    %cst_24 = arith.constant 9.99999971E-10 : f32
    %68 = vector.broadcast %cst_24 : f32 to vector<1x16x128xf32>
    %69 = arith.addf %67, %68 : vector<1x16x128xf32>
    %70 = arith.divf %65, %69 : vector<1x16x128xf32>
    %c0_25 = arith.constant 0 : index
    %c0_26 = arith.constant 0 : index
    %c0_27 = arith.constant 0 : index
    %71 = vector.load %arg7[%c0_25, %c0_26, %c0_27] : memref<1x16x128xf32, #tpu.memory_space<vmem>>, vector<1x16x128xf32>
    %72 = arith.mulf %3, %70 : vector<1x16x128xf32>
    %73 = arith.subf %1, %72 : vector<1x16x128xf32>
    %74 = arith.mulf %73, %63 : vector<1x16x128xf32>
    %75 = arith.addf %71, %74 : vector<1x16x128xf32>
    %c0_28 = arith.constant 0 : index
    %c0_29 = arith.constant 0 : index
    %c0_30 = arith.constant 0 : index
    %76 = vector.load %arg7[%c0_28, %c0_29, %c0_30] : memref<1x16x128xf32, #tpu.memory_space<vmem>>, vector<1x16x128xf32>
    tpu.vector_store %arg7[%c0_28, %c0_29, %c0_30], %75 {strides = array<i32>} : memref<1x16x128xf32, #tpu.memory_space<vmem>>, vector<1x16x128xf32>,
    %c0_31 = arith.constant 0 : index
    %c0_32 = arith.constant 0 : index
    %c0_33 = arith.constant 0 : index
    %77 = vector.load %arg8[%c0_31, %c0_32, %c0_33] : memref<1x16x128xf32, #tpu.memory_space<vmem>>, vector<1x16x128xf32>
    %78 = arith.addf %77, %63 : vector<1x16x128xf32>
    %c0_34 = arith.constant 0 : index
    %c0_35 = arith.constant 0 : index
    %c0_36 = arith.constant 0 : index
    %79 = vector.load %arg8[%c0_34, %c0_35, %c0_36] : memref<1x16x128xf32, #tpu.memory_space<vmem>>, vector<1x16x128xf32>
    tpu.vector_store %arg8[%c0_34, %c0_35, %c0_36], %78 {strides = array<i32>} : memref<1x16x128xf32, #tpu.memory_space<vmem>>, vector<1x16x128xf32>,
    %c3_i32 = arith.constant 3 : i32
    %80 = arith.cmpi eq, %arg1, %c3_i32 : i32
    %81 = arith.extui %80 : i1 to i32
    %c0_i32_37 = arith.constant 0 : i32
    %82 = arith.cmpi ne, %81, %c0_i32_37 : i32
    scf.if %82 {
      %c0_38 = arith.constant 0 : index
      %c0_39 = arith.constant 0 : index
      %c0_40 = arith.constant 0 : index
      %83 = vector.load %arg7[%c0_38, %c0_39, %c0_40] : memref<1x16x128xf32, #tpu.memory_space<vmem>>, vector<1x16x128xf32>
      %cst_41 = arith.constant -1.050000e+01 : f32
      %cst_42 = arith.constant 1.050000e+01 : f32
      %84 = vector.broadcast %cst_41 : f32 to vector<1x16x128xf32>
      %85 = arith.maximumf %84, %83 : vector<1x16x128xf32>
      %86 = vector.broadcast %cst_42 : f32 to vector<1x16x128xf32>
      %87 = arith.minimumf %86, %85 : vector<1x16x128xf32>
      %88 = arith.subf %83, %87 : vector<1x16x128xf32>
      %c0_43 = arith.constant 0 : index
      %c0_44 = arith.constant 0 : index
      %c0_45 = arith.constant 0 : index
      %89 = vector.load %arg8[%c0_43, %c0_44, %c0_45] : memref<1x16x128xf32, #tpu.memory_space<vmem>>, vector<1x16x128xf32>
      %cst_46 = arith.constant 9.99999971E-10 : f32
      %90 = vector.broadcast %cst_46 : f32 to vector<1x16x128xf32>
      %91 = arith.addf %89, %90 : vector<1x16x128xf32>
      %92 = arith.divf %88, %91 : vector<1x16x128xf32>
      %93 = arith.subf %5, %92 : vector<1x16x128xf32>
      %94 = arith.mulf %93, %93 : vector<1x16x128xf32>
      %cst_47 = arith.constant dense<0.000000e+00> : vector<16x128xf32>
      %95 = vector.multi_reduction <add>, %94, %cst_47 [0] : vector<1x16x128xf32> to vector<16x128xf32>
      %96 = vector.shape_cast %95 : vector<16x128xf32> to vector<1x16x128xf32>
      %cst_48 = arith.constant dense<0.000000e+00> : vector<1xf32>
      %97 = vector.multi_reduction <add>, %96, %cst_48 [1, 2] : vector<1x16x128xf32> to vector<1xf32>
      %98 = vector.shape_cast %97 : vector<1xf32> to vector<1x1x1xf32>
      %99 = vector.extract %98[0, 0, 0] : f32 from vector<1x1x1xf32>
      %100 = vector.broadcast %99 : f32 to vector<1x1xf32>
      %cst_49 = arith.constant 0.000000e+00 : f32
      %101 = vector.broadcast %cst_49 : f32 to vector<1x8x128xf32>
      %102 = vector.shape_cast %100 : vector<1x1xf32> to vector<1x1x1xf32>
      %103 = vector.broadcast %102 : vector<1x1x1xf32> to vector<1x8x128xf32>
      %104 = arith.addf %101, %103 : vector<1x8x128xf32>
      %c0_50 = arith.constant 0 : index
      %c0_51 = arith.constant 0 : index
      %c0_52 = arith.constant 0 : index
      %105 = vector.load %arg6[%c0_50, %c0_51, %c0_52] : memref<1x8x128xf32, #tpu.memory_space<vmem>>, vector<1x8x128xf32>
      tpu.vector_store %arg6[%c0_50, %c0_51, %c0_52], %104 {strides = array<i32>} : memref<1x8x128xf32, #tpu.memory_space<vmem>>, vector<1x8x128xf32>,
    } else {
    }
    return
  }
  func.func @transform_0(%arg0: i32, %arg1: i32) -> (i32, i32, i32, i32) {
    %c0_i32 = arith.constant 0 : i32
    %c0_i32_0 = arith.constant 0 : i32
    %c0_i32_1 = arith.constant 0 : i32
    %c0_i32_2 = arith.constant 0 : i32
    return %arg0, %c0_i32, %c0_i32_0, %c0_i32_1 : i32, i32, i32, i32
  }
  func.func @transform_1(%arg0: i32, %arg1: i32) -> (i32, i32, i32, i32) {
    %c0_i32 = arith.constant 0 : i32
    %c0_i32_0 = arith.constant 0 : i32
    %c0_i32_1 = arith.constant 0 : i32
    %c0_i32_2 = arith.constant 0 : i32
    return %arg0, %c0_i32, %c0_i32_0, %c0_i32_1 : i32, i32, i32, i32
  }
  func.func @transform_2(%arg0: i32, %arg1: i32) -> (i32, i32, i32, i32) {
    %c0_i32 = arith.constant 0 : i32
    %c0_i32_0 = arith.constant 0 : i32
    %c0_i32_1 = arith.constant 0 : i32
    %c0_i32_2 = arith.constant 0 : i32
    return %arg0, %c0_i32, %c0_i32_0, %c0_i32_1 : i32, i32, i32, i32
  }
  func.func @transform_3(%arg0: i32, %arg1: i32) -> (i32, i32, i32, i32) {
    %c0_i32 = arith.constant 0 : i32
    %c0_i32_0 = arith.constant 0 : i32
    %c0_i32_1 = arith.constant 0 : i32
    return %arg0, %arg1, %c0_i32, %c0_i32_0 : i32, i32, i32, i32
  }
  func.func @transform_4(%arg0: i32, %arg1: i32) -> (i32, i32, i32) {
    %c0_i32 = arith.constant 0 : i32
    %c0_i32_0 = arith.constant 0 : i32
    %c0_i32_1 = arith.constant 0 : i32
    return %arg0, %c0_i32, %c0_i32_0 : i32, i32, i32
  }
}

</mosaic_0001>

<bundles_post_ra>
// kernel: tpu_custom_call.1
= control target key start
LH: loop header
LB: loop body
LE: loop exit
PB: predicated region body
PF: predicated region fallthrough
CT: control target
= control target key end

     0   :  { %s1646_s0 = inlined_call_operand.hbm [shape: f32[2,1,16,128], index: 0, kind: input, shape index: {}]   ;;  %s1647_s1 = inlined_call_operand.hbm [shape: f32[2,1,16,128], index: 1, kind: input, shape index: {}]   ;;  %s1648_s2 = inlined_call_operand.hbm [shape: f32[2,1,16,128], index: 2, kind: input, shape index: {}]   ;;  %s1649_s3 = inlined_call_operand.hbm [shape: f32[2,4,16,128], index: 3, kind: input, shape index: {}]   ;;  %s1650_s4 = inlined_call_operand.hbm [shape: f32[2,8,128], index: 4, kind: output, shape index: {}]  }
   0x1   :  { %1667 = sst [smem:[#allocation26_spill]] %s1646_s0 }
   0x2   :  { %1668 = sst [smem:[#allocation27_spill]] %s1647_s1 }
   0x3   :  { %1669 = sst [smem:[#allocation28_spill]] %s1648_s2 }
   0x4   :  { %1670 = sst [smem:[#allocation29_spill]] %s1649_s3 }
   0x5   :  { %1671 = sst [smem:[#allocation30_spill]] %s1650_s4 }
   0x6   :  { %9 = vsyncpa [#allocation6], 0 }
   0x7   :  { %11 = vsyncpa [#allocation6 + $0x1], 0 }
   0x8   :  { %12 = vsyncpa [#allocation9], 0 }
   0x9   :  { %14 = vsyncpa [#allocation9 + $0x1], 0 }
   0xa   :  { %15 = vsyncpa [#allocation12], 0 }
   0xb   :  { %17 = vsyncpa [#allocation12 + $0x1], 0 }
   0xc   :  { %18 = vsyncpa [#allocation7], 0 }
   0xd   :  { %20 = vsyncpa [#allocation7 + $0x1], 0  ;;  %s1242_s15 = smov 0   ;;  %s1244_s16 = smov 0  }
   0xe   :  { %s1246_s17 = smov 0   ;;  %s1248_s18 = smov 0  }
   0xf   :  { %s1250_s19 = smov 0   ;;  %s1252_s20 = smov 0  }
  0x10   :  { %s1254_s21 = smov 0   ;;  %s1256_s22 = smov 0  }
  0x11   :  { %s1258_s23 = smov 0   ;;  %s1260_s24 = smov 0  }
  0x12   :  { %s1262_s25 = smov 0  }
  0x13 LB: > { %1672 = sst [smem:[#allocation18_spill]] %s1174_s18  ;;  %s1298_s26 = sadd.s32 4294967295, %s1202_s25   ;;  %s1202_s25 = sphi %s1262_s25, %s26_s25   ;;  %s1198_s24 = sphi %s1260_s24, %s1719_s24   ;;  %s1194_s23 = sphi %s1258_s23, %s1718_s23   ;;  %s1190_s22 = sphi %s1256_s22, %s1717_s22   ;;  %s1186_s21 = sphi %s1254_s21, %s1716_s21   ;;  %s1182_s20 = sphi %s1252_s20, %s1715_s20   ;;  %s1178_s19 = sphi %s1250_s19, %s1714_s19   ;;  %s1174_s18 = sphi %s1248_s18, %s1713_s18   ;;  %s1170_s17 = sphi %s1246_s17, %s1712_s17   ;;  %s1166_s16 = sphi %s1244_s16, %s1711_s16   ;;  %s1162_s15 = sphi %s1242_s15, %s1710_s15  }
  0x14   : > { %1673 = sst [smem:[#allocation19_spill]] %s1186_s21  ;;  %s784_s27 = sadd.s32 4294967294, %s1202_s25  }
  0x15   : > { %1674 = sst [smem:[#allocation20_spill]] %s1190_s22  ;;  %p52_p0 = scmp.ne.s32.totalorder %s1182_s20, %s1178_s19 }
  0x16   : > { %p1654_p1 = scmp.eq.s32.totalorder %s1202_s25, 0  ;;  %p58_p2 = scmp.ne.s32.totalorder %s1178_s19, %s1174_s18 }
  0x17   : > { %p162_p3 = scmp.eq.s32.totalorder %s1298_s26, 7  ;;  %p168_p4 = scmp.eq.s32.totalorder %s784_s27, 7 }
  0x18   : > { %p54_p5 = por %p1654_p1, %p52_p0  ;;  %p1653_p8 = scmp.lt.s32.totalorder %s1202_s25, 8 }
  0x19   : > { %p1310_p6 = por %p162_p3, %p52_p0  ;;  %p1317_p7 = por %p168_p4, %p58_p2 }
  0x1a   : > { %s1651_s5 = sand.u32 1, %s1182_s20   ;;  %s1328_s7 = sshll.u32 %s1198_s24, 8 }
  0x1b   : > { %s1675_s29 = scalar_select %p1310_p6, 1, 0 }
  0x1c   : > { %s1677_s30 = scalar_select %p1317_p7, 1, 0 }
  0x1d   : > { %1676 = sst [smem:[#allocation21_spill]] %s1675_s29  ;;  %s1325_s6 = sshll.u32 %s1651_s5, 4 }
  0x1e   : > { %1678 = sst [smem:[#allocation22_spill]] %s1677_s30  ;;  %p1332_p9 = pnand %p1653_p8, %p54_p5 }
  0x1f   : > { %s209_s9 = sand.u32 1, %s1202_s25   ;;  %s1680_s1 = sld [smem:[#allocation27_spill]] }
  0x20   : > { %s213_s13 = scalar_lea.vmem [#allocation8], %s1325_s6  ;;  %p800_p10 = scmp.ge.s32.totalorder %s1202_s25, 1 }
  0x21   : > { %s220_s14 = sshll.u32 %s213_s13, 4  ;;  %p272_p11 = scmp.lt.s32.totalorder %s1202_s25, 9  ;;  %s221_s14 = int_to_ptr.vmem [resolvable:$true] %s220_s14 }
  0x22   : > { %s1344_s27 = scalar_lea.sflag [#allocation9], %s209_s9  ;;  %p964_p12 = pneg %p1332_p9 }
  0x23   : > { %s975_s28 = scalar_lea.vmem %s221_s14, 256  ;;  %s1204_s5 = smov [#allocation8]  }
  0x24   : > { %p976_p13 = scmp.ne.s32.totalorder %s221_s14, %s975_s28  ;;  %s980_s30 = sshll.u32 %s1204_s5, 4  ;;  %s981_s30 = int_to_ptr.vmem [resolvable:$false] %s980_s30 }
  0x25   : > { %s219_s12 = scalar_lea.hbm %s1680_s1, %s1328_s7  ;;  %s982_s10 = scalar_lea.vmem %s981_s30, 512 }
  0x26   : > { %p978_p0 = pnand %p976_p13, %p964_p12  ;;  %p983_p4 = scmp.lt.s32.totalorder %s221_s14, %s981_s30 }
  0x27   : > { %p984_p5 = scmp.lt.s32.totalorder %s982_s10, %s975_s28 }
  0x28   : > { %p979_p3 = pneg %p978_p0 }
  0x29   : > { %p985_p8 = por %p984_p5, %p983_p4 }
  0x2b   : > { %p986_p1 = pnand %p985_p8, %p979_p3 }
  0x2d   : > { %989 = shalt.err (!%p986_p1)
}
  0x2e   : > { %s1658_s11 = smov 128   ;;  %s1660_s9 = smov 8  }
  0x2f   : > { %841 = dma.hbm_to_vmem [thread:$0]  (!%p1332_p9), %s219_s12, 256, %s221_s14, %s1344_s27, %s1658_s11, %s1658_s11, %s1660_s9  }
  0x30   : > { %p1361_p8 = pnand %p800_p10, %p272_p11  ;;  %s1682_s0 = sld [smem:[#allocation26_spill]] }
  0x31   : > { %s192_s10 = scalar_lea.vmem [#allocation5], %s1325_s6  ;;  %s1683_s2 = sld [smem:[#allocation28_spill]] }
  0x32   : > { %s199_s1 = sshll.u32 %s192_s10, 4  ;;  %s1684_s21 = sand.u32 1, %s1182_s20   ;;  %s200_s1 = int_to_ptr.vmem [resolvable:$true] %s199_s1 }
  0x33   : > { %s189_s3 = scalar_lea.sflag [#allocation6], %s1684_s21  ;;  %s1003_s12 = scalar_lea.vmem %s200_s1, 256 }
  0x34   : > { %p1004_p1 = scmp.ne.s32.totalorder %s200_s1, %s1003_s12  ;;  %s1207_s14 = smov [#allocation5]  }
  0x35   : > { %s1008_s11 = sshll.u32 %s1207_s14, 4  ;;  %s1009_s11 = int_to_ptr.vmem [resolvable:$false] %s1008_s11 }
  0x36   : > { %s198_s13 = scalar_lea.hbm %s1682_s0, %s1328_s7  ;;  %p1006_p10 = pnand %p1004_p1, %p964_p12 }
  0x37   : > { %s240_s22 = scalar_lea.hbm %s1683_s2, %s1328_s7  ;;  %s1010_s30 = scalar_lea.vmem %s1009_s11, 512 }
  0x38   : > { %p1007_p11 = pneg %p1006_p10  ;;  %p1011_p13 = scmp.lt.s32.totalorder %s200_s1, %s1009_s11 }
  0x39   : > { %p1012_p0 = scmp.lt.s32.totalorder %s1010_s30, %s1003_s12 }
  0x3b   : > { %p1013_p3 = por %p1012_p0, %p1011_p13 }
  0x3d   : > { %p1014_p4 = pnand %p1013_p3, %p1007_p11 }
  0x3f   : > { %1017 = shalt.err (!%p1014_p4)
}
  0x40   : > { %s1685_s4 = smov 128   ;;  %s234_s21 = scalar_lea.vmem [#allocation10], %s1325_s6 }
  0x41   : > { %838 = dma.hbm_to_vmem [thread:$0]  (!%p1332_p9), %s198_s13, 256, %s200_s1, %s189_s3, %s1685_s4, %s1685_s4, %s1660_s9  }
  0x42   : > { %s241_s29 = sshll.u32 %s234_s21, 4  ;;  %s1208_s11 = smov [#allocation10]   ;;  %s242_s29 = int_to_ptr.vmem [resolvable:$true] %s241_s29 }
  0x43   : > { %s1031_s5 = scalar_lea.vmem %s242_s29, 256  ;;  %s1036_s10 = sshll.u32 %s1208_s11, 4  ;;  %s1037_s10 = int_to_ptr.vmem [resolvable:$false] %s1036_s10 }
  0x44   : > { %p1032_p5 = scmp.ne.s32.totalorder %s242_s29, %s1031_s5  ;;  %s1038_s12 = scalar_lea.vmem %s1037_s10, 512 }
  0x45   : > { %p1039_p11 = scmp.lt.s32.totalorder %s242_s29, %s1037_s10  ;;  %p1040_p13 = scmp.lt.s32.totalorder %s1038_s12, %s1031_s5 }
  0x46   : > { %p1034_p1 = pnand %p1032_p5, %p964_p12 }
  0x47   : > { %p1041_p0 = por %p1040_p13, %p1039_p11 }
  0x48   : > { %p1035_p10 = pneg %p1034_p1 }
  0x4a   : > { %p1042_p3 = pnand %p1041_p0, %p1035_p10 }
  0x4c   : > { %1045 = shalt.err (!%p1042_p3)
}
  0x4d   : > { %844 = dma.hbm_to_vmem [thread:$0]  (!%p1332_p9), %s240_s22, 256, %s242_s29, %s1344_s27, %s1685_s4, %s1685_s4, %s1660_s9  }
  0x4e   : > { %s35_s6 = sadd.s32 1, %s1194_s23  ;;  %s38_s8 = sadd.s32 1, %s1198_s24 }
  0x4f   : > { %p36_p12 = scmp.ge.s32.totalorder %s35_s6, 4  ;;  %p59_p4 = scmp.eq.s32.totalorder %s1298_s26, 0 }
  0x50   : > { %s125_s7 = sadd.s32 1, %s1170_s17  ;;  %p132_p5 = scmp.ne.s32.totalorder %s1170_s17, %s1166_s16 }
  0x51   : > { %s1721_s6 = smov (%p36_p12, %s35_s6), 0  ;;  %s1723_s8 = smov (!%p36_p12, %s38_s8), %s1198_s24 }
  0x52   : > { %1686 = sst [smem:[#allocation23_spill]] %s1721_s6  ;;  %p1411_p1 = por %p59_p4, %p58_p2 }
  0x53   : > { %s121_s22 = ssub.s32 %s1194_s23, %s1721_s6  ;;  %p40_p9 = scmp.ge.s32.totalorder %s1723_s8, 2 }
  0x54   : > { %p1688_p10 = scmp.eq.s32.totalorder %s1202_s25, 0  ;;  %p138_p13 = scmp.ne.s32.totalorder %s1166_s16, %s1162_s15 }
  0x55   : > { %s251_s14 = sand.u32 1, %s1170_s17   ;;  %s1725_s8 = smov (%p40_p9, %s1723_s8), 0 }
  0x56   : > { %p1419_p11 = por %p132_p5, %p1688_p10  ;;  %1690 = sst [smem:[#allocation24_spill]] %s1725_s8 }
  0x57   : > { %p1428_p0 = por %p138_p13, %p59_p4  ;;  %s42_s21 = ssub.s32 %s1198_s24, %s1725_s8 }
  0x58   : > { %s796_s29 = sshll.u32 %s251_s14, 4  ;;  %p43_p2 = scmp.eq.s32.totalorder %s42_s21, 0 }
  0x59   : > { %s1691_s30 = scalar_select %p1428_p0, 1, 0 }
  0x5a   : > { %s122_s5 = sor.u32 %s121_s22, %s42_s21  ;;  %s1693_s11 = sadd.s32 1, %s1182_s20 }
  0x5b   : > { %1692 = sst [smem:[#allocation25_spill]] %s1691_s30  ;;  %p123_p3 = scmp.eq.s32.totalorder %s122_s5, 0 }
  0x5c   : > { %s1437_s10 = scalar_select %p43_p2, %s1182_s20, %s1693_s11  }
  0x5d   : > { %s1440_s12 = scalar_select %p123_p3, %s1170_s17, %s125_s7  }
  0x5e   : > { %s797_s15 = sshll.u32 %s1194_s23, 1  ;;  %s798_s1 = sshll.u32 %s1198_s24, 3 }
  0x5f   : > { %s261_s3 = sadd.s32 %s798_s1, %s797_s15  ;;  %s255_s9 = scalar_lea.vmem [#allocation11], %s796_s29 }
  0x60   : > { %s264_s0 = sshll.u32 %s255_s9, 4  ;;  %s799_s2 = sshll.u32 %s261_s3, 7  ;;  %s265_s0 = int_to_ptr.vmem [resolvable:$true] %s264_s0 }
  0x61   : > { %s1694_s30 = sld [smem:[#allocation29_spill]]  ;;  %p1695_p12 = scmp.lt.s32.totalorder %s1202_s25, 8 }
  0x62   : > { %s252_s7 = scalar_lea.sflag [#allocation12], %s251_s14  ;;  %s1059_s21 = scalar_lea.vmem %s265_s0, 256 }
  0x63   : > { %p1451_p4 = pnand %p1695_p12, %p1419_p11  ;;  %p1060_p9 = scmp.ne.s32.totalorder %s265_s0, %s1059_s21 }
  0x64   : > { %s1209_s9 = smov [#allocation11]  }
  0x65   : > { %p1048_p5 = pneg %p1451_p4  ;;  %s1064_s29 = sshll.u32 %s1209_s9, 4  ;;  %s1065_s29 = int_to_ptr.vmem [resolvable:$false] %s1064_s29 }
  0x66   : > { %s1066_s5 = scalar_lea.vmem %s1065_s29, 512  ;;  %p1067_p2 = scmp.lt.s32.totalorder %s265_s0, %s1065_s29 }
  0x67   : > { %s263_s8 = scalar_lea.hbm %s1694_s30, %s799_s2  ;;  %p1062_p10 = pnand %p1060_p9, %p1048_p5 }
  0x68   : > { %p1068_p3 = scmp.lt.s32.totalorder %s1066_s5, %s1059_s21 }
  0x69   : > { %p1063_p13 = pneg %p1062_p10 }
  0x6a   : > { %p1069_p7 = por %p1068_p3, %p1067_p2 }
  0x6c   : > { %p1070_p6 = pnand %p1069_p7, %p1063_p13 }
  0x6e   : > { %1073 = shalt.err (!%p1070_p6)
}
  0x6f   : > { %s1697_s2 = smov 8   ;;  %276 = sbr.rel (%p1361_p8) target bundleno = 712 (0x2c8), region = 36 }
  0x70   : > { %847 = dma.hbm_to_vmem [thread:$0]  (!%p1451_p4), %s263_s8, 256, %s265_s0, %s252_s7, %s1685_s4, %s1685_s4, %s1697_s2  }
  0x71   : > { %s1465_s18 = sand.u32 (!%p1361_p8), 1, %s1178_s19  }
  0x72   : > { %s1468_s6 = sshll.u32 (!%p1361_p8), %s1465_s18, 4  ;;  %s279_s27 = scalar_lea.sflag (!%p1361_p8), [#allocation6], %s1465_s18 }
  0x73   : > { %s282_s14 = scalar_lea.vmem (!%p1361_p8), [#allocation5], %s1468_s6 }
  0x74   : > { %1145 = dma.done.wait (%p1411_p1), %s279_s27, 256  }
  0x75   : > { %1147 = vsyncadd (%p1411_p1), %s279_s27, 4294967040  ;;  %s287_s0 = sand.u32 1, %s1298_s26   ;;  %s291_s4 = scalar_lea.vmem [#allocation8], %s1468_s6 }
  0x76   : > { %s288_s28 = scalar_lea.sflag [#allocation9], %s287_s0 }
  0x77   : > { %1149 = dma.done.wait (%p1411_p1), %s288_s28, 512  }
  0x78   : > { %1151 = vsyncadd (%p1411_p1), %s288_s28, 4294966784  ;;  %s305_s30 = sand.u32 1, %s1166_s16   ;;  %s300_s15 = scalar_lea.vmem [#allocation10], %s1468_s6 }
  0x79   : > { %s1483_s11 = sshll.u32 %s305_s30, 4  ;;  %s306_s1 = scalar_lea.sflag [#allocation12], %s305_s30 }
  0x7a   : > { %s309_s3 = scalar_lea.vmem [#allocation11], %s1483_s11 }
  0x7b   : > { %1153 = dma.done.wait (%p1428_p0), %s306_s1, 256  }
  0x7c   : > { %1155 = vsyncadd (%p1428_p0), %s306_s1, 4294967040  ;;  %v357_v0 = vlaneseq  ;;  %s805_s26 = sshll.u32 %s1465_s18, 3  ;;  %v1210_v4 = vmov 0.0   ;;  %v1502_v8 = vld [vmem:[%s282_s14] sm:$0xff]  ;;  %v1504_v9 = vld [vmem:[%s282_s14 + $0x8] sm:$0xff]  ;;  %s1699_s22 = sld [smem:[#allocation19_spill]] }
  0x7d   : > { %v1506_v10 = vld [vmem:[%s291_s4] sm:$0xff]  ;;  %v1510_v12 = vld [vmem:[%s291_s4 + $0x8] sm:$0xff]  ;;  %vm380_vm4 = vcmp.gt.f32.partialorder %v1502_v8, 0.0  ;;  %vm381_vm5 = vcmp.gt.f32.partialorder %v1504_v9, 0.0  ;;  %s1518_s13 = scalar_lea.vmem [#allocation13], %s805_s26 }
  0x7e   : > { %v1492_v1 = vshrl.u32 %v357_v0, 7  ;;  %v361_v2 = vand.u32 127, %v357_v0  ;;  %v1512_v13 = vld [vmem:[%s300_s15] sm:$0xff]  ;;  %v1514_v14 = vld [vmem:[%s300_s15 + $0x8] sm:$0xff]  ;;  %v810_v17 = vsel %vm380_vm4, 1.0, %v1210_v4  ;;  %v811_v18 = vsel %vm381_vm5, 1.0, %v1210_v4 }
  0x7f   : > { %v355_v15 = vld [vmem:[%s309_s3] sm:$0xff]  ;;  %v356_v16 = vld [vmem:[%s309_s3 + $0x8] sm:$0xff] }
  0x80   : > { %v359_v3 = vadd.s32 8, %v1492_v1  ;;  %vm362_vm0 = vcmp.ge.s32.totalorder %v1492_v1, 1  ;;  %vm368_vm1 = vcmp.ge.s32.totalorder %v361_v2, 1  ;;  %vm377_vm2 = vcmp.lt.s32.totalorder %v361_v2, 127 }
  0x81   : > { %v1496_v5 = vsel %vm362_vm0, 1.0, %v1210_v4  ;;  %v1498_v6 = vsel %vm368_vm1, 1.0, %v1210_v4  ;;  %v1500_v7 = vsel %vm377_vm2, 1.0, %v1210_v4 }
  0x82   : > { %vm372_vm3 = vcmp.lt.s32.totalorder %v359_v3, 15  ;;  %p812_p6 = scmp.ne.s32.totalorder %s1699_s22, 0 }
  0x83   : > { %v1508_v11 = vsel %vm372_vm3, 1.0, %v1210_v4  ;;  %s1211_s7 = smov (!%p812_p6), 1   ;;  %s1212_s21 = smov (!%p812_p6), 127  }
  0x84   : > { %389 = sbr.rel (%p812_p6) target bundleno = 288 (0x120), region = 56 }
  0x89   : > { %v394_v19 = vrot.slane %v810_v17, 7  ;;  %v395_v20 = vrot.slane %v811_v18, 7  ;;  %vm396_vm6 = vcmp.lt.s32.totalorder %v1492_v1, 1  ;;  %v403_v21 = vrot.slane %v810_v17, 1 }
  0x8a   : > { %v404_v22 = vrot.slane %v811_v18, 1  ;;  %vm405_vm7 = vcmp.lt.s32.totalorder %v1492_v1, 7  ;;  %v1213_v33 = vmov 0.0  }
  0x8b   : > { %v398_v23 = vsel %vm396_vm6, %v395_v20, %v394_v19  ;;  %v397_v24 = vsel %vm396_vm6, %v394_v19, %v395_v20  ;;  %390 = vst [vmem:[#allocation2] sm:$0xff] %v1213_v33  ;;  %391 = vst [vmem:[#allocation2 + $0x8] sm:$0xff] %v1213_v33 }
  0x8c   : > { %v399_v25 = vmul.f32 %v1496_v5, %v398_v23  ;;  %v407_v26 = vsel %vm405_vm7, %v404_v22, %v403_v21  ;;  %v406_v27 = vsel %vm405_vm7, %v403_v21, %v404_v22  ;;  %v402_v29 = vadd.f32 %v811_v18, %v397_v24  ;;  %392 = vst [vmem:[#allocation3 + $0x8] sm:$0xff] %v1213_v33 }
  0x8d   : > { %v409_v30 = vmul.f32 %v1508_v11, %v407_v26  ;;  %393 = vst [vmem:[#allocation3] sm:$0xff] %v1213_v33 }
  0x8e   : > { %v401_v28 = vadd.f32 %v810_v17, %v399_v25 }
  0x8f   : > { %v411_v32 = vadd.f32 %v409_v30, %v402_v29 }
  0x90   : > { %v410_v31 = vadd.f32 %v406_v27, %v401_v28 }
  0x92   : > { %412 = vrot.lane.b32.xlu0 %v410_v31, %s1211_s7  ;;  %420 = vrot.lane.b32.xlu1 %v410_v31, %s1212_s21 }
  0x96   : > { %414 = vrot.lane.b32.xlu0 %v411_v32, %s1211_s7  ;;  %422 = vrot.lane.b32.xlu1 %v411_v32, %s1212_s21 }
 0x104   : > { %v413_v34 = vpop.permute.xlu0 %412  ;;  %v421_v35 = vpop.permute.xlu1 %420 }
 0x105   : > { %v416_v36 = vmul.f32 %v1498_v6, %v413_v34  ;;  %v424_v37 = vmul.f32 %v1500_v7, %v421_v35 }
 0x107   : > { %v418_v38 = vadd.f32 %v416_v36, %v410_v31 }
 0x108   : > { %v415_v39 = vpop.permute.xlu0 %414  ;;  %v423_v40 = vpop.permute.xlu1 %422 }
 0x109   : > { %v426_v41 = vadd.f32 %v424_v37, %v418_v38  ;;  %v417_v42 = vmul.f32 %v1498_v6, %v415_v39  ;;  %v425_v43 = vmul.f32 %v1500_v7, %v423_v40 }
 0x10b   : > { %v428_v44 = vadd.f32 1e-09, %v426_v41  ;;  %v419_v45 = vadd.f32 %v417_v42, %v411_v32 }
 0x10d   : > { %950 = vrcp.f32 %v428_v44  ;;  %v427_v46 = vadd.f32 %v425_v43, %v419_v45 }
 0x10f   : > { %v429_v47 = vadd.f32 1e-09, %v427_v46 }
 0x111   : > { %952 = vrcp.f32 %v429_v47 }
 0x11a   : > { %v951_v48 = vpop.eup %950 }
 0x11b   : > { %434 = vst [vmem:[#allocation4 + $0x8] sm:$0xff] %v951_v48 }
 0x11e   : > { %v953_v49 = vpop.eup %952 }
 0x11f   : > { %435 = vst [vmem:[#allocation4] sm:$0xff] %v953_v49 }
 0x120 PF: > { %v438_v50 = vmul.f32 %v355_v15, %v355_v15  ;;  %v439_v51 = vmul.f32 %v356_v16, %v356_v16  ;;  %v446_v52 = vmul.f32 %v1506_v10, %v1506_v10  ;;  %v447_v53 = vmul.f32 %v1510_v12, %v1510_v12  ;;  %s1214_s9 = smov 1   ;;  %s1215_s29 = smov 127  }
 0x121   : > { %v442_v54 = vsub.f32 %v1502_v8, %v1512_v13  ;;  %v443_v55 = vsub.f32 %v1504_v9, %v1514_v14  ;;  %vm458_vm8 = vcmp.lt.s32.totalorder %v1492_v1, 1  ;;  %vm483_vm9 = vcmp.lt.s32.totalorder %v1492_v1, 7  ;;  %s1700_s5 = sld [smem:[#allocation19_spill]] }
 0x122   : > { %v440_v56 = vmul.f32 %v810_v17, %v438_v50  ;;  %v441_v57 = vmul.f32 %v811_v18, %v439_v51 }
 0x123   : > { %v444_v58 = vmul.f32 %v442_v54, %v1506_v10  ;;  %v445_v59 = vmul.f32 %v443_v55, %v1510_v12 }
 0x124   : > { %v450_v60 = vmul.f32 %v446_v52, %v440_v56  ;;  %v451_v61 = vmul.f32 %v447_v53, %v441_v57  ;;  %v452_v31 = vrot.slane %v440_v56, 7  ;;  %v455_v32 = vrot.slane %v441_v57, 7 }
 0x125   : > { %v448_v62 = vmul.f32 %v444_v58, %v440_v56  ;;  %v449_v63 = vmul.f32 %v445_v59, %v441_v57  ;;  %v477_v40 = vrot.slane %v440_v56, 1  ;;  %v480_v41 = vrot.slane %v441_v57, 1 }
 0x126   : > { %v454_v0 = vrot.slane %v450_v60, 7  ;;  %v457_v2 = vrot.slane %v451_v61, 7  ;;  %v479_v3 = vrot.slane %v450_v60, 1  ;;  %v482_v4 = vrot.slane %v451_v61, 1 }
 0x127   : > { %v453_v15 = vrot.slane %v448_v62, 7  ;;  %v456_v16 = vrot.slane %v449_v63, 7  ;;  %v478_v17 = vrot.slane %v448_v62, 1  ;;  %v481_v21 = vrot.slane %v449_v63, 1  ;;  %p813_p7 = scmp.ne.s32.totalorder %s1700_s5, 3 }
 0x128   : > { %v464_v18 = vsel %vm458_vm8, %v457_v2, %v454_v0  ;;  %v461_v19 = vsel %vm458_vm8, %v454_v0, %v457_v2  ;;  %v489_v20 = vsel %vm483_vm9, %v482_v4, %v479_v3  ;;  %v486_v24 = vsel %vm483_vm9, %v479_v3, %v482_v4 }
 0x129   : > { %v469_v22 = vmul.f32 %v1496_v5, %v464_v18  ;;  %v463_v23 = vsel %vm458_vm8, %v456_v16, %v453_v15  ;;  %v476_v25 = vadd.f32 %v461_v19, %v451_v61  ;;  %v495_v26 = vmul.f32 %v1508_v11, %v489_v20 }
 0x12a   : > { %v467_v28 = vmul.f32 %v1496_v5, %v463_v23  ;;  %v460_v29 = vsel %vm458_vm8, %v453_v15, %v456_v16  ;;  %v488_v30 = vsel %vm483_vm9, %v481_v21, %v478_v17  ;;  %v485_v38 = vsel %vm483_vm9, %v478_v17, %v481_v21 }
 0x12b   : > { %v475_v27 = vadd.f32 %v469_v22, %v450_v60  ;;  %v501_v34 = vadd.f32 %v495_v26, %v476_v25  ;;  %v474_v36 = vadd.f32 %v460_v29, %v449_v63  ;;  %v493_v37 = vmul.f32 %v1508_v11, %v488_v30  ;;  %v437_v63 = vld [vmem:[#allocation4] sm:$0xff] }
 0x12c   : > { %v473_v35 = vadd.f32 %v467_v28, %v448_v62  ;;  %v462_v39 = vsel %vm458_vm8, %v455_v32, %v452_v31  ;;  %v459_v45 = vsel %vm458_vm8, %v452_v31, %v455_v32  ;;  %v487_v46 = vsel %vm483_vm9, %v480_v41, %v477_v40 }
 0x12d   : > { %v500_v33 = vadd.f32 %v486_v24, %v475_v27  ;;  %v499_v43 = vadd.f32 %v493_v37, %v474_v36  ;;  %v465_v44 = vmul.f32 %v1496_v5, %v462_v39  ;;  %v472_v48 = vadd.f32 %v459_v45, %v441_v57  ;;  %v436_v57 = vld [vmem:[#allocation4 + $0x8] sm:$0xff] }
 0x12e   : > { %v498_v42 = vadd.f32 %v485_v38, %v473_v35  ;;  %v491_v49 = vmul.f32 %v1508_v11, %v487_v46  ;;  %v484_v50 = vsel %vm483_vm9, %v477_v40, %v480_v41  ;;  %v574_v41 = vld [vmem:[#allocation3 + $0x8] sm:$0xff] }
 0x12f   : > { %510 = vrot.lane.b32.xlu0 %v500_v33, %s1214_s9  ;;  %534 = vrot.lane.b32.xlu1 %v500_v33, %s1215_s29  ;;  %v471_v47 = vadd.f32 %v465_v44, %v440_v56 }
 0x130   : > { %v497_v52 = vadd.f32 %v491_v49, %v472_v48 }
 0x131   : > { %v496_v51 = vadd.f32 %v484_v50, %v471_v47 }
 0x133   : > { %512 = vrot.lane.b32.xlu0 %v501_v34, %s1214_s9  ;;  %536 = vrot.lane.b32.xlu1 %v501_v34, %s1215_s29 }
 0x137   : > { %506 = vrot.lane.b32.xlu0 %v498_v42, %s1214_s9  ;;  %508 = vrot.lane.b32.xlu1 %v499_v43, %s1214_s9 }
 0x13b   : > { %530 = vrot.lane.b32.xlu0 %v498_v42, %s1215_s29  ;;  %532 = vrot.lane.b32.xlu1 %v499_v43, %s1215_s29 }
 0x13f   : > { %502 = vrot.lane.b32.xlu0 %v496_v51, %s1214_s9  ;;  %504 = vrot.lane.b32.xlu1 %v497_v52, %s1214_s9 }
 0x143   : > { %526 = vrot.lane.b32.xlu0 %v496_v51, %s1215_s29  ;;  %528 = vrot.lane.b32.xlu1 %v497_v52, %s1215_s29 }
 0x1a1   : > { %v511_v5 = vpop.permute.xlu0 %510  ;;  %v535_v53 = vpop.permute.xlu1 %534 }
 0x1a2   : > { %v518_v54 = vmul.f32 %v1498_v6, %v511_v5  ;;  %v542_v55 = vmul.f32 %v1500_v7, %v535_v53 }
 0x1a4   : > { %v524_v56 = vadd.f32 %v518_v54, %v500_v33 }
 0x1a5   : > { %v513_v11 = vpop.permute.xlu0 %512  ;;  %v537_v58 = vpop.permute.xlu1 %536 }
 0x1a6   : > { %v548_v1 = vadd.f32 %v542_v55, %v524_v56  ;;  %v519_v59 = vmul.f32 %v1498_v6, %v513_v11  ;;  %v543_v60 = vmul.f32 %v1500_v7, %v537_v58  ;;  %v563_v55 = vld [vmem:[#allocation2 + $0x8] sm:$0xff] }
 0x1a8   : > { %v554_v61 = vmul.f32 %v548_v1, %v436_v57  ;;  %v525_v62 = vadd.f32 %v519_v59, %v501_v34 }
 0x1a9   : > { %v507_v0 = vpop.permute.xlu0 %506  ;;  %v509_v2 = vpop.permute.xlu1 %508 }
 0x1aa   : > { %v556_v3 = vadd.f32 1e-09, %v554_v61  ;;  %v549_v4 = vadd.f32 %v543_v60, %v525_v62  ;;  %v516_v15 = vmul.f32 %v1498_v6, %v507_v0  ;;  %v517_v22 = vmul.f32 %v1498_v6, %v509_v2 }
 0x1ac   : > { %954 = vrcp.f32 %v556_v3  ;;  %v555_v16 = vmul.f32 %v549_v4, %v437_v63  ;;  %v522_v20 = vadd.f32 %v516_v15, %v498_v42  ;;  %v523_v28 = vadd.f32 %v517_v22, %v499_v43  ;;  %v575_v42 = vld [vmem:[#allocation3] sm:$0xff] }
 0x1ad   : > { %v531_v17 = vpop.permute.xlu0 %530  ;;  %v533_v18 = vpop.permute.xlu1 %532 }
 0x1ae   : > { %v557_v19 = vadd.f32 1e-09, %v555_v16  ;;  %v540_v21 = vmul.f32 %v1500_v7, %v531_v17  ;;  %v541_v29 = vmul.f32 %v1500_v7, %v533_v18 }
 0x1b0   : > { %956 = vrcp.f32 %v557_v19  ;;  %v546_v25 = vadd.f32 %v540_v21, %v522_v20  ;;  %v547_v37 = vadd.f32 %v541_v29, %v523_v28 }
 0x1b1   : > { %v503_v23 = vpop.permute.xlu0 %502  ;;  %v505_v24 = vpop.permute.xlu1 %504 }
 0x1b2   : > { %v514_v26 = vmul.f32 %v1498_v6, %v503_v23  ;;  %v515_v27 = vmul.f32 %v1498_v6, %v505_v24  ;;  %v552_v34 = vmul.f32 %v546_v25, %v436_v57  ;;  %v553_v46 = vmul.f32 %v547_v37, %v437_v63 }
 0x1b4   : > { %v520_v30 = vadd.f32 %v514_v26, %v496_v51  ;;  %v521_v31 = vadd.f32 %v515_v27, %v497_v52 }
 0x1b5   : > { %v527_v32 = vpop.permute.xlu0 %526  ;;  %v529_v33 = vpop.permute.xlu1 %528 }
 0x1b6   : > { %v538_v35 = vmul.f32 %v1500_v7, %v527_v32  ;;  %v539_v36 = vmul.f32 %v1500_v7, %v529_v33  ;;  %v562_v7 = vld [vmem:[#allocation2] sm:$0xff] }
 0x1b8   : > { %v544_v38 = vadd.f32 %v538_v35, %v520_v30  ;;  %v545_v39 = vadd.f32 %v539_v36, %v521_v31 }
 0x1b9   : > { %v955_v40 = vpop.eup %954 }
 0x1ba   : > { %v559_v44 = vmul.f32 %v955_v40, %v552_v34  ;;  %v550_v6 = vmul.f32 %v544_v38, %v436_v57  ;;  %v551_v43 = vmul.f32 %v545_v39, %v437_v63 }
 0x1bc   : > { %v564_v45 = vmul.f32 %v559_v44, %v1506_v10  ;;  %v576_v47 = vadd.f32 %v574_v41, %v550_v6  ;;  %v577_v48 = vadd.f32 %v575_v42, %v551_v43 }
 0x1bd   : > { %v957_v49 = vpop.eup %956 }
 0x1be   : > { %v566_v50 = vsub.f32 %v1502_v8, %v564_v45  ;;  %v561_v51 = vmul.f32 %v957_v49, %v553_v46  ;;  %578 = vst [vmem:[#allocation3 + $0x8] sm:$0xff] %v576_v47  ;;  %579 = vst [vmem:[#allocation3] sm:$0xff] %v577_v48 }
 0x1c0   : > { %v565_v52 = vmul.f32 %v561_v51, %v1510_v12  ;;  %v568_v5 = vmul.f32 %v566_v50, %v550_v6 }
 0x1c2   : > { %v567_v53 = vsub.f32 %v1504_v9, %v565_v52  ;;  %v570_v54 = vadd.f32 %v568_v5, %v562_v7 }
 0x1c4   : > { %572 = vst [vmem:[#allocation2] sm:$0xff] %v570_v54  ;;  %v569_v56 = vmul.f32 %v567_v53, %v551_v43  ;;  %583 = sbr.rel (%p813_p7) target bundleno = 685 (0x2ad), region = 60 }
 0x1c6   : > { %v571_v10 = vadd.f32 %v569_v56, %v563_v55 }
 0x1c8   : > { %573 = vst [vmem:[#allocation2 + $0x8] sm:$0xff] %v571_v10 }
 0x1c9   : > { %v592_v57 = vld [vmem:[#allocation3 + $0x8] sm:$0xff]  ;;  %v593_v8 = vld [vmem:[#allocation3] sm:$0xff] }
 0x1ca   : > { %v594_v11 = vadd.f32 1e-09, %v592_v57  ;;  %v595_v58 = vadd.f32 1e-09, %v593_v8 }
 0x1cb   : > { %v584_v1 = vld [vmem:[#allocation2] sm:$0xff] }
 0x1cc   : > { %958 = vrcp.f32 %v594_v11  ;;  %v814_v59 = vclamps-f32 %v584_v1, 10.5 }
 0x1cd   : > { %960 = vrcp.f32 %v595_v58 }
 0x1ce   : > { %v590_v9 = vsub.f32 %v584_v1, %v814_v59 }
 0x1cf   : > { %v585_v12 = vld [vmem:[#allocation2 + $0x8] sm:$0xff] }
 0x1d0   : > { %v815_v60 = vclamps-f32 %v585_v12, 10.5 }
 0x1d2   : > { %v591_v61 = vsub.f32 %v585_v12, %v815_v60 }
 0x1d9   : > { %v959_v62 = vpop.eup %958 }
 0x1da   : > { %v961_v63 = vpop.eup %960  ;;  %v597_v0 = vmul.f32 %v959_v62, %v590_v9 }
 0x1db   : > { %v599_v2 = vmul.f32 %v961_v63, %v591_v61 }
 0x1dc   : > { %v600_v3 = vsub.f32 %v1512_v13, %v597_v0 }
 0x1dd   : > { %v601_v4 = vsub.f32 %v1514_v14, %v599_v2 }
 0x1de   : > { %v602_v15 = vmul.f32 %v600_v3, %v600_v3 }
 0x1df   : > { %v603_v16 = vmul.f32 %v601_v4, %v601_v4 }
 0x1e1   : > { %v606_v17 = vadd.f32 %v603_v16, %v602_v15 }
 0x1e3   : > { %607 = vadd.xlane.f32.xlu0 %v606_v17 }
 0x26c   : > { %v608_v18 = vpop.xlane.xlu0 %607 }
 0x26d   : > { %v609_v19 = vrot.slane %v608_v18, 4 }
 0x26f   : > { %v610_v20 = vadd.f32 %v609_v19, %v608_v18 }
 0x271   : > { %v611_v21 = vrot.slane %v610_v20, 2 }
 0x273   : > { %v612_v22 = vadd.f32 %v611_v21, %v610_v20 }
 0x275   : > { %v613_v23 = vrot.slane %v612_v22, 1 }
 0x277   : > { %v614_v24 = vadd.f32 %v613_v23, %v612_v22 }
 0x279   : > { %823 = vpush %v614_v24 }
 0x2aa   : > { %s824_s2 = spop %823 }
 0x2ab   : > { %v616_v25 = vstv %s824_s2 }
 0x2ac   : > { %618 = vst [vmem:[%s1518_s13] sm:$0xff] %v616_v25 }
 0x2ad PF: > { %s1701_s6 = sld [smem:[#allocation20_spill]]  ;;  %s633_s30 = sshll.u32 %s1518_s13, 4  ;;  %s634_s30 = int_to_ptr.vmem [resolvable:$true] %s633_s30 }
 0x2ae   : > { %s1702_s27 = sld [smem:[#allocation21_spill]]  ;;  %s620_s11 = scalar_lea.sflag [#allocation7], %s1465_s18 }
 0x2af   : > { %s1703_s4 = sld [smem:[#allocation30_spill]]  ;;  %s1074_s15 = scalar_lea.vmem %s634_s30, 128 }
 0x2b0   : > { %p1075_p8 = scmp.ne.s32.totalorder %s634_s30, %s1074_s15  ;;  %s1216_s1 = smov [#allocation13]  }
 0x2b1   : > { %s1078_s3 = sshll.u32 %s1216_s1, 4  ;;  %s1079_s3 = int_to_ptr.vmem [resolvable:$false] %s1078_s3 }
 0x2b2   : > { %s1080_s26 = scalar_lea.vmem %s1079_s3, 256  ;;  %p1081_p12 = scmp.lt.s32.totalorder %s634_s30, %s1079_s3 }
 0x2b3   : > { %s817_s14 = sshll.u32 %s1701_s6, 7  ;;  %p1082_p4 = scmp.lt.s32.totalorder %s1080_s26, %s1074_s15 }
 0x2b4   : > { %p1704_p1 = scmp.ne.s32.totalorder %s1702_s27, 0 }
 0x2b5   : > { %s631_s8 = scalar_lea.hbm %s1703_s4, %s817_s14  ;;  %p1083_p5 = por %p1082_p4, %p1081_p12 }
 0x2b6   : > { %p1076_p11 = pnand %p1075_p8, %p1704_p1 }
 0x2b8   : > { %p1077_p0 = pneg %p1076_p11 }
 0x2ba   : > { %p1084_p9 = pnand %p1083_p5, %p1077_p0 }
 0x2bc   : > { %1087 = shalt.err (!%p1084_p9)
}
 0x2bd   : > { %s1088_s22 = scalar_lea.hbm %s631_s8, 128  ;;  %s1092_s7 = scalar_lea.hbm %s1703_s4, 256 }
 0x2be   : > { %p1089_p10 = scmp.ne.s32.totalorder %s631_s8, %s1088_s22  ;;  %p1093_p3 = scmp.lt.s32.totalorder %s631_s8, %s1703_s4 }
 0x2bf   : > { %p1094_p6 = scmp.lt.s32.totalorder %s1092_s7, %s1088_s22 }
 0x2c0   : > { %p1090_p13 = pnand %p1089_p10, %p1704_p1 }
 0x2c1   : > { %p1095_p7 = por %p1094_p6, %p1093_p3 }
 0x2c2   : > { %p1091_p2 = pneg %p1090_p13 }
 0x2c4   : > { %p1096_p8 = pnand %p1095_p7, %p1091_p2 }
 0x2c6   : > { %1099 = shalt.err (!%p1096_p8)
}
 0x2c7   : > { %833 = dma.vmem_to_hbm [thread:$0]  (%p1704_p1), %s634_s30, 128, %s631_s8, %s620_s11  }
 0x2c8 PF: > { %s1705_s29 = sld [smem:[#allocation18_spill]]  ;;  %p853_p11 = scmp.ge.s32.totalorder %s1202_s25, 2 }
 0x2c9   : > { %s1706_s5 = sld [smem:[#allocation22_spill]] }
 0x2ce   : > { %s645_s2 = sand.u32 1, %s1705_s29  }
 0x2cf   : > { %p1707_p0 = scmp.ne.s32.totalorder %s1706_s5, 0  ;;  %s646_s6 = scalar_lea.sflag [#allocation7], %s645_s2 }
 0x2d1   : > { %p849_p12 = pnand %p853_p11, %p1707_p0 }
 0x2d3   : > { %p850_p4 = pneg %p849_p12 }
 0x2d5   : > { %1157 = dma.done.wait (%p850_p4), %s646_s6, 128  }
 0x2d6   : > { %1159 = vsyncadd (%p850_p4), %s646_s6, 4294967168  ;;  %s26_s25 = sadd.s32 1, %s1202_s25   ;;  %s1708_s27 = sld [smem:[#allocation23_spill]] }
 0x2d7   : > { %p23_p5 = scmp.ge.s32.totalorder %s26_s25, 10   ;;  %s1709_s14 = sld [smem:[#allocation24_spill]] }
 0x2d8   : > { %s1710_s15 = smov %s1166_s16  ;;  %s1711_s16 = smov %s1170_s17 }
 0x2d9   : > { %s1712_s17 = smov %s1440_s12  ;;  %s1713_s18 = smov %s1178_s19 }
 0x2da   : > { %s1714_s19 = smov %s1182_s20  ;;  %s1715_s20 = smov %s1437_s10 }
 0x2db   : > { %s1716_s21 = smov %s1194_s23  ;;  %s1717_s22 = smov %s1198_s24 }
 0x2dc   : > { %s1718_s23 = smov %s1708_s27  ;;  %25 = sbr.rel (!%p23_p5) target bundleno = 19 (0x13), region = 126 }
 0x2dd   : > { %s1719_s24 = smov %s1709_s14 }
 0x2e1   :  { %651 = vsyncpa [#allocation6], 1 }
 0x2e2   :  { %653 = vsyncpa [#allocation6 + $0x1], 1 }
 0x2e3   :  { %654 = vsyncpa [#allocation9], 1 }
 0x2e4   :  { %656 = vsyncpa [#allocation9 + $0x1], 1 }
 0x2e5   :  { %657 = vsyncpa [#allocation12], 1 }
 0x2e6   :  { %659 = vsyncpa [#allocation12 + $0x1], 1 }
 0x2e7   :  { %660 = vsyncpa [#allocation7], 1 }
 0x2e8   :  { %662 = vsyncpa [#allocation7 + $0x1], 1 }

</bundles_post_ra>
